<compile_context>
chip_gen: v6e
topology: v6e:2x2x1
jax: 0.10.0
libtpu: 0.0.40
codegen_flags: <defaults>
</compile_context>

<pallas_src>
import functools

import jax
import jax.numpy as jnp
from jax.experimental import pallas as pl
from jax.experimental.pallas import tpu as pltpu


def multiplex_gnnq_kernel(x_ref, adj_c_ref, adj_p_ref,
                          w_cat_ref, w_att_ref,
                          w_out_t_ref, b_out_ref,
                          out_ref, *, hidden_dim):
    H = hidden_dim

    # Fused GCN feature transform: x @ [W_chem | W_protein]  (bf16 MXU, f32 acc)
    xw = jnp.dot(x_ref[...], w_cat_ref[...],
                 preferred_element_type=jnp.float32)             # (N, 2H) f32
    xw_bf = xw.astype(jnp.bfloat16)                              # bf16 for the adj matmuls

    # GraphConvolution aggregation: adj @ (x @ W)  (bf16 MXU, f32 acc)
    xc = jnp.dot(adj_c_ref[...], xw_bf[:, :H],
                 preferred_element_type=jnp.float32)             # (N, H) f32
    xp = jnp.dot(adj_p_ref[...], xw_bf[:, H:],
                 preferred_element_type=jnp.float32)             # (N, H) f32

    # get_attention_weights, transpose-free and fused:
    #   scores[:, 0] = concat(xc, xp) . weight_chem_t
    #   scores[:, 1] = concat(xc, xp) . weight_protein_t
    xcp = jnp.concatenate([xc, xp], axis=1)                      # (N, 2H) f32
    scores = jnp.dot(xcp, w_att_ref[...],
                     preferred_element_type=jnp.float32)         # (N, 2) f32

    # softmax over the node axis (torch: F.softmax(w_concat, dim=1) on a (2, N) matrix)
    m = jnp.max(scores, axis=0, keepdims=True)
    e = jnp.exp(scores - m)
    att = e * pl.reciprocal(jnp.sum(e, axis=0, keepdims=True), approx=True)  # (N, 2)

    # attention-weighted fusion + ReLU (all f32 on the VPU)
    h = jnp.maximum(att[:, 0:1] * xc + att[:, 1:2] * xp, 0.0)    # (N, H)

    # F.linear(h, weight_out, bias_out) == h @ weight_out.T + bias_out
    # (weights pre-transposed and lane-padded to 128 in the wrapper)
    out = jnp.dot(h, w_out_t_ref[...],
                  preferred_element_type=jnp.float32) + b_out_ref[...]
    out_ref[...] = out.astype(out_ref.dtype)


def multiplex_gnnq_forward(x, adj_chem, adj_protein,
                           w_chem, w_protein,
                           weight_chem_t, weight_protein_t,
                           weight_out, bias_out):
    N, F = x.shape
    H = w_chem.shape[1]
    C = weight_out.shape[0]
    C_pad = ((C + 127) // 128) * 128                             # lane-dense output width

    # ---- glue: kernel-friendly, fused parameter layouts -------------------
    # bf16 MXU operands (accumulation stays f32 inside the kernel)
    x_bf = x.astype(jnp.bfloat16)
    adj_c_bf = adj_chem.astype(jnp.bfloat16)
    adj_p_bf = adj_protein.astype(jnp.bfloat16)
    w_cat = jnp.concatenate([w_chem, w_protein], axis=1).astype(jnp.bfloat16)   # (F, 2H)

    # both attention-score vectors as one (2H, 2) matrix: col 0 = chem, col 1 = protein
    w_att = jnp.stack([weight_chem_t.reshape(2 * H),
                       weight_protein_t.reshape(2 * H)], axis=1).astype(jnp.float32)

    # output linear, transposed and padded out to 128 lanes (extra cols are zero)
    w_out_t = jnp.zeros((H, C_pad), jnp.float32).at[:, :C].set(
        weight_out.T.astype(jnp.float32))
    b_out = jnp.zeros((1, C_pad), jnp.float32).at[:, :C].set(
        bias_out.astype(jnp.float32))

    im = lambda i: (0, 0)
    in_specs = [
        pl.BlockSpec((N, F), im),          # x            (bf16)
        pl.BlockSpec((N, N), im),          # adj_chem     (bf16)
        pl.BlockSpec((N, N), im),          # adj_protein  (bf16)
        pl.BlockSpec((F, 2 * H), im),      # [W_chem | W_protein] (bf16)
        pl.BlockSpec((2 * H, 2), im),      # stacked attention weights (f32)
        pl.BlockSpec((H, C_pad), im),      # weight_out.T padded (f32)
        pl.BlockSpec((1, C_pad), im),      # bias_out padded (f32)
    ]
    out_specs = pl.BlockSpec((N, C_pad), im)

    kernel = functools.partial(multiplex_gnnq_kernel, hidden_dim=H)
    out_padded = pl.pallas_call(
        kernel,
        out_shape=jax.ShapeDtypeStruct((N, C_pad), jnp.float32),
        grid=(1,),
        in_specs=in_specs,
        out_specs=out_specs,
        compiler_params=pltpu.CompilerParams(
            dimension_semantics=("arbitrary",)),
    )(x_bf, adj_c_bf, adj_p_bf, w_cat, w_att, w_out_t, b_out)

    return out_padded[:, :C]


def _reference_forward(x, adj_c, adj_p, w_c, w_p, wct, wpt, w_out, b_out):
    xc = adj_c @ (x @ w_c)
    xp = adj_p @ (x @ w_p)
    c_n = jnp.concatenate([xc.T, xp.T], axis=0)              # (2H, N)
    w_chem = wct @ c_n                                        # (1, N)
    w_prot = wpt @ c_n                                        # (1, N)
    w_concat = jnp.concatenate([w_chem, w_prot], axis=0)      # (2, N)
    att = jax.nn.softmax(w_concat, axis=1)
    h = jax.nn.relu(att[0][:, None] * xc + att[1][:, None] * xp)
    return h @ w_out.T + b_out[None, :]


if __name__ == "__main__":
    # small shapes consistent with the module
    N = 64          # number of graph nodes
    F_DIM = 32      # opt['num_feature']
    H = 32          # opt['hidden_dim']
    C = 8           # opt['num_class']

    key = jax.random.PRNGKey(0)
    keys = jax.random.split(key, 10)

    x = jax.random.normal(keys[0], (N, F_DIM), dtype=jnp.float32)

    # deterministic dense, row-normalized adjacencies (stand-ins for adj_chem / adj_protein)
    def make_adj(k):
        a = (jax.random.uniform(k, (N, N)) < 0.2).astype(jnp.float32)
        a = a + a.T + jnp.eye(N, dtype=jnp.float32)
        a = jnp.minimum(a, 1.0)
        return a / jnp.sum(a, axis=1, keepdims=True)

    adj_chem = make_adj(keys[1])
    adj_protein = make_adj(keys[2])

    # parameters (deterministic init mimicking the PyTorch uniform ranges)
    std_gcn = 1.0 / jnp.sqrt(jnp.float32(H))
    w_chem = jax.random.uniform(keys[3], (F_DIM, H), minval=-std_gcn, maxval=std_gcn)
    w_protein = jax.random.uniform(keys[4], (F_DIM, H), minval=-std_gcn, maxval=std_gcn)

    std_att = 1.0 / jnp.sqrt(jnp.float32(2 * H))
    weight_chem_t = jax.random.uniform(keys[5], (1, 2 * H), minval=-std_att, maxval=std_att)
    weight_protein_t = jax.random.uniform(keys[6], (1, 2 * H), minval=-std_att, maxval=std_att)

    std_out = 1.0 / jnp.sqrt(jnp.float32(C))
    weight_out = jax.random.uniform(keys[7], (C, H), minval=-std_out, maxval=std_out)
    bias_out = jax.random.uniform(keys[8], (C,), minval=-std_out, maxval=std_out)

    out = multiplex_gnnq_forward(x, adj_chem, adj_protein,
                                 w_chem, w_protein,
                                 weight_chem_t, weight_protein_t,
                                 weight_out, bias_out)
    out = jax.block_until_ready(out)

    ref = _reference_forward(x, adj_chem, adj_protein, w_chem, w_protein,
                             weight_chem_t, weight_protein_t, weight_out, bias_out)
    assert out.shape == (N, C)
    # tolerance relaxed because MXU operands are bf16 (f32 accumulation)
    assert jnp.allclose(out, ref, atol=1e-2, rtol=1e-2), "mismatch vs jnp reference"
    print("KERNEL_OK")
</pallas_src>

<mosaic_0001>
module attributes {stable_mosaic.version = 11 : i64} {
  func.func @multiplex_gnnq_kernel(%arg0: i32, %arg1: memref<64x32xbf16, #tpu.memory_space<vmem>>, %arg2: memref<64x64xbf16, #tpu.memory_space<vmem>>, %arg3: memref<64x64xbf16, #tpu.memory_space<vmem>>, %arg4: memref<32x64xbf16, #tpu.memory_space<vmem>>, %arg5: memref<64x2xf32, #tpu.memory_space<vmem>>, %arg6: memref<32x128xf32, #tpu.memory_space<vmem>>, %arg7: memref<1x128xf32, #tpu.memory_space<vmem>>, %arg8: memref<64x128xf32, #tpu.memory_space<vmem>>) attributes {dimension_semantics = [#tpu.dimension_semantics<arbitrary>], iteration_bounds = array<i64: 1>, scalar_prefetch = 0 : i64, scratch_operands = 0 : i64, tpu.core_type = #tpu.core_type<tc>, window_params = [{pipeline_mode = #tpu.pipeline_mode<synchronous>, transform_indices = @transform_0, window_bounds = array<i64: 64, 32>}, {pipeline_mode = #tpu.pipeline_mode<synchronous>, transform_indices = @transform_1, window_bounds = array<i64: 64, 64>}, {pipeline_mode = #tpu.pipeline_mode<synchronous>, transform_indices = @transform_2, window_bounds = array<i64: 64, 64>}, {pipeline_mode = #tpu.pipeline_mode<synchronous>, transform_indices = @transform_3, window_bounds = array<i64: 32, 64>}, {pipeline_mode = #tpu.pipeline_mode<synchronous>, transform_indices = @transform_4, window_bounds = array<i64: 64, 2>}, {pipeline_mode = #tpu.pipeline_mode<synchronous>, transform_indices = @transform_5, window_bounds = array<i64: 32, 128>}, {pipeline_mode = #tpu.pipeline_mode<synchronous>, transform_indices = @transform_6, window_bounds = array<i64: 1, 128>}, {pipeline_mode = #tpu.pipeline_mode<synchronous>, transform_indices = @transform_7, window_bounds = array<i64: 64, 128>}]} {
    %c0 = arith.constant 0 : index
    %c0_0 = arith.constant 0 : index
    %0 = vector.load %arg1[%c0, %c0_0] : memref<64x32xbf16, #tpu.memory_space<vmem>>, vector<64x32xbf16>
    %c0_1 = arith.constant 0 : index
    %c0_2 = arith.constant 0 : index
    %1 = vector.load %arg4[%c0_1, %c0_2] : memref<32x64xbf16, #tpu.memory_space<vmem>>, vector<32x64xbf16>
    %cst = arith.constant dense<0.000000e+00> : vector<64x64xf32>
    %2 = tpu.matmul %0, %1, %cst {dimension_numbers = #tpu.dot_dimension_numbers<[1], [0], [0], [1], [0, 0, 1, 1], [], []>} : vector<64x32xbf16>, vector<32x64xbf16>, vector<64x64xf32> -> vector<64x64xf32>
    %3 = arith.truncf %2 : vector<64x64xf32> to vector<64x64xbf16>
    %c0_3 = arith.constant 0 : index
    %c0_4 = arith.constant 0 : index
    %4 = vector.load %arg2[%c0_3, %c0_4] : memref<64x64xbf16, #tpu.memory_space<vmem>>, vector<64x64xbf16>
    %5 = vector.extract_strided_slice %3 {offsets = [0, 0], sizes = [64, 32], strides = [1, 1]} : vector<64x64xbf16> to vector<64x32xbf16>
    %cst_5 = arith.constant dense<0.000000e+00> : vector<64x32xf32>
    %6 = tpu.matmul %4, %5, %cst_5 {dimension_numbers = #tpu.dot_dimension_numbers<[1], [0], [0], [1], [0, 0, 1, 1], [], []>} : vector<64x64xbf16>, vector<64x32xbf16>, vector<64x32xf32> -> vector<64x32xf32>
    %c0_6 = arith.constant 0 : index
    %c0_7 = arith.constant 0 : index
    %7 = vector.load %arg3[%c0_6, %c0_7] : memref<64x64xbf16, #tpu.memory_space<vmem>>, vector<64x64xbf16>
    %8 = vector.extract_strided_slice %3 {offsets = [0, 32], sizes = [64, 32], strides = [1, 1]} : vector<64x64xbf16> to vector<64x32xbf16>
    %cst_8 = arith.constant dense<0.000000e+00> : vector<64x32xf32>
    %9 = tpu.matmul %7, %8, %cst_8 {dimension_numbers = #tpu.dot_dimension_numbers<[1], [0], [0], [1], [0, 0, 1, 1], [], []>} : vector<64x64xbf16>, vector<64x32xbf16>, vector<64x32xf32> -> vector<64x32xf32>
    %10 = tpu.concatenate %6, %9 in 1 : vector<64x32xf32>, vector<64x32xf32> -> vector<64x64xf32>
    %c0_9 = arith.constant 0 : index
    %c0_10 = arith.constant 0 : index
    %11 = vector.load %arg5[%c0_9, %c0_10] : memref<64x2xf32, #tpu.memory_space<vmem>>, vector<64x2xf32>
    %cst_11 = arith.constant dense<0.000000e+00> : vector<64x2xf32>
    %12 = tpu.matmul %10, %11, %cst_11 {dimension_numbers = #tpu.dot_dimension_numbers<[1], [0], [0], [1], [0, 0, 1, 1], [], []>} : vector<64x64xf32>, vector<64x2xf32>, vector<64x2xf32> -> vector<64x2xf32>
    %cst_12 = arith.constant dense<0xFF800000> : vector<2xf32>
    %13 = vector.multi_reduction <maximumf>, %12, %cst_12 [0] : vector<64x2xf32> to vector<2xf32>
    %14 = vector.shape_cast %13 : vector<2xf32> to vector<1x2xf32>
    %15 = vector.broadcast %14 : vector<1x2xf32> to vector<64x2xf32>
    %16 = arith.subf %12, %15 : vector<64x2xf32>
    %17 = math.exp %16 : vector<64x2xf32>
    %cst_13 = arith.constant dense<0.000000e+00> : vector<2xf32>
    %18 = vector.multi_reduction <add>, %17, %cst_13 [0] : vector<64x2xf32> to vector<2xf32>
    %19 = vector.shape_cast %18 : vector<2xf32> to vector<1x2xf32>
    %20 = tpu.reciprocal %19 {approx = true} : vector<1x2xf32> -> vector<1x2xf32>
    %21 = vector.broadcast %20 : vector<1x2xf32> to vector<64x2xf32>
    %22 = arith.mulf %17, %21 : vector<64x2xf32>
    %23 = vector.extract_strided_slice %22 {offsets = [0, 0], sizes = [64, 1], strides = [1, 1]} : vector<64x2xf32> to vector<64x1xf32>
    %24 = vector.broadcast %23 : vector<64x1xf32> to vector<64x32xf32>
    %25 = arith.mulf %24, %6 : vector<64x32xf32>
    %26 = vector.extract_strided_slice %22 {offsets = [0, 1], sizes = [64, 1], strides = [1, 1]} : vector<64x2xf32> to vector<64x1xf32>
    %27 = vector.broadcast %26 : vector<64x1xf32> to vector<64x32xf32>
    %28 = arith.mulf %27, %9 : vector<64x32xf32>
    %29 = arith.addf %25, %28 : vector<64x32xf32>
    %cst_14 = arith.constant 0.000000e+00 : f32
    %30 = vector.broadcast %cst_14 : f32 to vector<64x32xf32>
    %31 = arith.maximumf %29, %30 : vector<64x32xf32>
    %c0_15 = arith.constant 0 : index
    %c0_16 = arith.constant 0 : index
    %32 = vector.load %arg6[%c0_15, %c0_16] : memref<32x128xf32, #tpu.memory_space<vmem>>, vector<32x128xf32>
    %cst_17 = arith.constant dense<0.000000e+00> : vector<64x128xf32>
    %33 = tpu.matmul %31, %32, %cst_17 {dimension_numbers = #tpu.dot_dimension_numbers<[1], [0], [0], [1], [0, 0, 1, 1], [], []>} : vector<64x32xf32>, vector<32x128xf32>, vector<64x128xf32> -> vector<64x128xf32>
    %c0_18 = arith.constant 0 : index
    %c0_19 = arith.constant 0 : index
    %34 = vector.load %arg7[%c0_18, %c0_19] : memref<1x128xf32, #tpu.memory_space<vmem>>, vector<1x128xf32>
    %35 = vector.broadcast %34 : vector<1x128xf32> to vector<64x128xf32>
    %36 = arith.addf %33, %35 : vector<64x128xf32>
    %c0_20 = arith.constant 0 : index
    %c0_21 = arith.constant 0 : index
    %37 = vector.load %arg8[%c0_20, %c0_21] : memref<64x128xf32, #tpu.memory_space<vmem>>, vector<64x128xf32>
    tpu.vector_store %arg8[%c0_20, %c0_21], %36 {strides = array<i32>} : memref<64x128xf32, #tpu.memory_space<vmem>>, vector<64x128xf32>,
    return
  }
  func.func @transform_0(%arg0: i32) -> (i32, i32) {
    %c0_i32 = arith.constant 0 : i32
    %c0_i32_0 = arith.constant 0 : i32
    %c0_i32_1 = arith.constant 0 : i32
    return %c0_i32, %c0_i32_0 : i32, i32
  }
  func.func @transform_1(%arg0: i32) -> (i32, i32) {
    %c0_i32 = arith.constant 0 : i32
    %c0_i32_0 = arith.constant 0 : i32
    %c0_i32_1 = arith.constant 0 : i32
    return %c0_i32, %c0_i32_0 : i32, i32
  }
  func.func @transform_2(%arg0: i32) -> (i32, i32) {
    %c0_i32 = arith.constant 0 : i32
    %c0_i32_0 = arith.constant 0 : i32
    %c0_i32_1 = arith.constant 0 : i32
    return %c0_i32, %c0_i32_0 : i32, i32
  }
  func.func @transform_3(%arg0: i32) -> (i32, i32) {
    %c0_i32 = arith.constant 0 : i32
    %c0_i32_0 = arith.constant 0 : i32
    %c0_i32_1 = arith.constant 0 : i32
    return %c0_i32, %c0_i32_0 : i32, i32
  }
  func.func @transform_4(%arg0: i32) -> (i32, i32) {
    %c0_i32 = arith.constant 0 : i32
    %c0_i32_0 = arith.constant 0 : i32
    %c0_i32_1 = arith.constant 0 : i32
    return %c0_i32, %c0_i32_0 : i32, i32
  }
  func.func @transform_5(%arg0: i32) -> (i32, i32) {
    %c0_i32 = arith.constant 0 : i32
    %c0_i32_0 = arith.constant 0 : i32
    %c0_i32_1 = arith.constant 0 : i32
    return %c0_i32, %c0_i32_0 : i32, i32
  }
  func.func @transform_6(%arg0: i32) -> (i32, i32) {
    %c0_i32 = arith.constant 0 : i32
    %c0_i32_0 = arith.constant 0 : i32
    %c0_i32_1 = arith.constant 0 : i32
    return %c0_i32, %c0_i32_0 : i32, i32
  }
  func.func @transform_7(%arg0: i32) -> (i32, i32) {
    %c0_i32 = arith.constant 0 : i32
    %c0_i32_0 = arith.constant 0 : i32
    %c0_i32_1 = arith.constant 0 : i32
    return %c0_i32, %c0_i32_0 : i32, i32
  }
}

</mosaic_0001>

<bundles_post_ra>
// kernel: tpu_custom_call.1
= control target key start
LH: loop header
LB: loop body
LE: loop exit
PB: predicated region body
PF: predicated region fallthrough
CT: control target
= control target key end

     0   :  { %vm72_vm0 = vcmask 261120   ;;  %s1433_s0 = inlined_call_operand.vmem [shape: bf16[64,32], index: 0, kind: input, shape index: {}]   ;;  %s1434_s1 = inlined_call_operand.vmem [shape: bf16[64,64], index: 1, kind: input, shape index: {}]   ;;  %s1435_s2 = inlined_call_operand.vmem [shape: bf16[64,64], index: 2, kind: input, shape index: {}]   ;;  %s1436_s3 = inlined_call_operand.vmem [shape: bf16[32,64], index: 3, kind: input, shape index: {}]   ;;  %s1437_s4 = inlined_call_operand.vmem [shape: f32[64,2], index: 4, kind: input, shape index: {}]   ;;  %s1438_s5 = inlined_call_operand.vmem [shape: f32[32,128], index: 5, kind: input, shape index: {}]   ;;  %s1439_s6 = inlined_call_operand.vmem [shape: f32[1,128], index: 6, kind: input, shape index: {}]   ;;  %s1440_s7 = inlined_call_operand.hbm [shape: f32[64,128], index: 7, kind: output, shape index: {}]  }
   0x1   :  { %v1113_v0 = vld [vmem:[%s1436_s3 + $0x8] sm:$0xff]   ;;  %v1114_v1 = vld [vmem:[%s1436_s3] sm:$0xff]   ;;  %v1117_v4 = vld [vmem:[%s1433_s0 + $0x10] sm:$0xff]  }
   0x2   :  { %995 = vmatprep.subr.bf16.mxu0 %v1113_v0  ;;  %v1115_v2 = vld [vmem:[%s1433_s0] sm:$0xff]   ;;  %v1116_v3 = vld [vmem:[%s1433_s0 + $0x8] sm:$0xff]  }
   0x3   :  { %996 = vmatpush3.bf16.msra.mxu0 %v1113_v0  ;;  %999 = vmatprep.mubr.msk.bf16.mxu0 %vm72_vm0, %v1115_v2 }
   0x4   :  { %997 = vmatprep.subr.bf16.mxu0 %v1114_v1 }
   0x7   :  { %998 = vmatpush3.bf16.msra.mxu0 %v1114_v1 }
   0xa   :  { %1000 = vmatmul.mubr.msk.bf16.vlgmr.msra.gmra.mxu0 %vm72_vm0, %v1116_v3 }
   0xb   :  { %1003 = vmatprep.mubr.msk.bf16.mxu0 %vm72_vm0, %v1117_v4 }
   0xc   :  { %12 = vsyncpa [#allocation3], 0  ;;  %v1118_v5 = vld [vmem:[%s1433_s0 + $0x18] sm:$0xff]   ;;  %s1167_s12 = smov 96   ;;  %vm182_vm1 = vcmask 523264   ;;  %v1119_v18 = vld [vmem:[%s1435_s2] sm:$0xff]  }
   0xd   :  { %v1123_v19 = vld [vmem:[%s1434_s1] sm:$0xff]   ;;  %v1124_v20 = vld [vmem:[%s1434_s1 + $0x8] sm:$0xff]   ;;  %v1125_v21 = vld [vmem:[%s1434_s1 + $0x10] sm:$0xff]   ;;  %s1168_s17 = smov 32   ;;  %vm558_vm2 = vcmask 15360  }
   0xe   :  { %1015 = vmatprep.mubr.msk.bf16.mxu1 %vm182_vm1, %v1123_v19  ;;  %v1126_v22 = vld [vmem:[%s1434_s1 + $0x18] sm:$0xff]   ;;  %v1120_v27 = vld [vmem:[%s1435_s2 + $0x8] sm:$0xff]   ;;  %v1121_v28 = vld [vmem:[%s1435_s2 + $0x10] sm:$0xff]  }
   0xf   :  { %v1122_v29 = vld [vmem:[%s1435_s2 + $0x18] sm:$0xff]   ;;  %v427_v31 = vld [vmem:[%s1437_s4 + $0x30] sm:$0xff]  ;;  %v426_v32 = vld [vmem:[%s1437_s4 + $0x28] sm:$0xff] }
  0x10   :  { %v428_v30 = vld [vmem:[%s1437_s4 + $0x38] sm:$0xff]  ;;  %v425_v33 = vld [vmem:[%s1437_s4 + $0x20] sm:$0xff]  ;;  %v423_v35 = vld [vmem:[%s1437_s4 + $0x10] sm:$0xff] }
  0x11   :  { %v424_v34 = vld [vmem:[%s1437_s4 + $0x18] sm:$0xff]  ;;  %v422_v36 = vld [vmem:[%s1437_s4 + $0x8] sm:$0xff]  ;;  %v421_v37 = vld [vmem:[%s1437_s4] sm:$0xff] }
  0x12   :  { %1004 = vmatmul.mubr.msk.bf16.gmra.mxu0 %vm72_vm0, %v1118_v5 }
  0x13   :  { %1031 = vmatprep.mubr.msk.bf16.mxu0 %vm182_vm1, %v1119_v18 }
  0xca   :  { %v1001_v6 = vpop.f32.mrf.mxu0 }
  0xcc   :  { %v119_v7 = vpop.f32.mrf.mxu0 }
  0xce   :  { %v1002_v8 = vpop.f32.mrf.mxu0 }
  0xcf   :  { %v151_v9 = vpack.c.bf16 %v1002_v8, %v1001_v6  ;;  %v1169_v6 = vmov 1  }
  0xd0   :  { %v122_v10 = vpop.f32.mrf.mxu0  ;;  %1103 = vset.pattern.permute.xlu1 %v1169_v6 }
  0xd1   :  { %294 = vrot.lane.b32.xlu1 %v151_v9, %s1167_s12  ;;  %v150_v12 = vpack.c.bf16 %v122_v10, %v119_v7  ;;  %v1170_v7 = vmov 0  }
  0xd2   :  { %v1005_v11 = vpop.f32.mrf.mxu0  ;;  %1102 = vset.pattern.permute.xlu0 %v1170_v7 }
  0xd4   :  { %v135_v13 = vpop.f32.mrf.mxu0 }
  0xd5   :  { %292 = vrot.lane.b32.xlu1 %v150_v12, %s1167_s12 }
  0xd6   :  { %v1006_v14 = vpop.f32.mrf.mxu0 }
  0xd7   :  { %v153_v15 = vpack.c.bf16 %v1006_v14, %v1005_v11 }
  0xd8   :  { %v138_v16 = vpop.f32.mrf.mxu0 }
  0xd9   :  { %v152_v17 = vpack.c.bf16 %v138_v16, %v135_v13  ;;  %298 = vrot.lane.b32.xlu0 %v153_v15, %s1167_s12  ;;  %1007 = vmatprep.subr.bf16.mxu1 %v153_v15 }
  0xda   :  { %1008 = vmatpush3.bf16.msra.mxu1 %v153_v15 }
  0xdb   :  { %1009 = vmatprep.subr.bf16.mxu1 %v152_v17 }
  0xdd   :  { %296 = vrot.lane.b32.xlu0 %v152_v17, %s1167_s12 }
  0xde   :  { %1010 = vmatpush3.bf16.msra.mxu1 %v152_v17 }
  0xdf   :  { %1011 = vmatprep.subr.bf16.mxu1 %v151_v9 }
  0xe2   :  { %1012 = vmatpush3.bf16.msra.mxu1 %v151_v9 }
  0xe3   :  { %1013 = vmatprep.subr.bf16.mxu1 %v150_v12 }
  0xe6   :  { %1014 = vmatpush3.bf16.msra.mxu1 %v150_v12 }
  0xe7   :  { %1039 = vmatprep.subr.mxu1 %v428_v30 }
  0xe9   :  { %1016 = vmatmul.mubr.msk.bf16.vlgmr.msra.gmra.mxu1 %vm182_vm1, %v1124_v20 }
  0xea   :  { %1019 = vmatprep.mubr.msk.bf16.mxu1 %vm182_vm1, %v1125_v21  ;;  %1040 = vmatpush3.msra.mxu1 %v428_v30 }
  0xeb   :  { %1041 = vmatprep.subr.mxu1 %v427_v31 }
  0xec   :  { %1042 = vmatpush3.msra.mxu1 %v427_v31 }
  0xed   :  { %1043 = vmatprep.subr.mxu1 %v426_v32 }
  0xee   :  { %1044 = vmatpush3.msra.mxu1 %v426_v32 }
  0xef   :  { %1045 = vmatprep.subr.mxu1 %v425_v33 }
  0xf0   :  { %1046 = vmatpush3.msra.mxu1 %v425_v33 }
  0xf1   :  { %1020 = vmatmul.mubr.msk.bf16.gmra.mxu1 %vm182_vm1, %v1126_v22  ;;  %1047 = vmatprep.subr.mxu1 %v424_v34 }
  0xf2   :  { %1048 = vmatpush3.msra.mxu1 %v424_v34 }
  0xf3   :  { %1049 = vmatprep.subr.mxu1 %v423_v35 }
  0xf4   :  { %1050 = vmatpush3.msra.mxu1 %v423_v35 }
  0xf5   :  { %1051 = vmatprep.subr.mxu1 %v422_v36 }
  0xf6   :  { %1052 = vmatpush3.msra.mxu1 %v422_v36 }
  0xf7   :  { %1053 = vmatprep.subr.mxu1 %v421_v37 }
  0xf8   :  { %1054 = vmatpush3.msra.mxu1 %v421_v37 }
 0x143   :  { %v295_v24 = vpop.permute.xlu1 %294 }
 0x147   :  { %v293_v26 = vpop.permute.xlu1 %292 }
 0x14b   :  { %v299_v23 = vpop.permute.xlu0 %298 }
 0x14c   :  { %1023 = vmatprep.subr.bf16.mxu0 %v299_v23 }
 0x14d   :  { %1024 = vmatpush3.bf16.msra.mxu0 %v299_v23 }
 0x14f   :  { %v297_v25 = vpop.permute.xlu0 %296 }
 0x150   :  { %1025 = vmatprep.subr.bf16.mxu0 %v297_v25 }
 0x151   :  { %1026 = vmatpush3.bf16.msra.mxu0 %v297_v25 }
 0x152   :  { %1027 = vmatprep.subr.bf16.mxu0 %v295_v24 }
 0x155   :  { %1028 = vmatpush3.bf16.msra.mxu0 %v295_v24 }
 0x156   :  { %1029 = vmatprep.subr.bf16.mxu0 %v293_v26 }
 0x159   :  { %1030 = vmatpush3.bf16.msra.mxu0 %v293_v26 }
 0x15c   :  { %1032 = vmatmul.mubr.msk.bf16.vlgmr.msra.gmra.mxu0 %vm182_vm1, %v1120_v27 }
 0x15d   :  { %1035 = vmatprep.mubr.msk.bf16.mxu0 %vm182_vm1, %v1121_v28 }
 0x164   :  { %1036 = vmatmul.mubr.msk.bf16.gmra.mxu0 %vm182_vm1, %v1122_v29 }
 0x1a9   :  { %v1316_v46 = vpop.f32.mrf.mxu1 }
 0x1ab   :  { %v1318_v47 = vpop.f32.mrf.mxu1 }
 0x1ad   :  { %v1320_v48 = vpop.f32.mrf.mxu1 }
 0x1af   :  { %v1322_v49 = vpop.f32.mrf.mxu1 }
 0x1b1   :  { %v1324_v50 = vpop.f32.mrf.mxu1 }
 0x1b3   :  { %v1329_v53 = vpop.f32.mrf.mxu1 }
 0x1b5   :  { %v1336_v58 = vpop.f32.mrf.mxu1 }
 0x1b7   :  { %v1344_v63 = vpop.f32.mrf.mxu1 }
 0x21c   :  { %v1292_v38 = vpop.f32.mrf.mxu0 }
 0x21e   :  { %v1294_v39 = vpop.f32.mrf.mxu0 }
 0x21f   :  { %389 = vrot.lane.b32.xlu0 %v1294_v39, %s1168_s17 }
 0x220   :  { %v1297_v40 = vpop.f32.mrf.mxu0 }
 0x222   :  { %v1299_v41 = vpop.f32.mrf.mxu0 }
 0x223   :  { %393 = vrot.lane.b32.xlu0 %v1292_v38, %s1168_s17  ;;  %391 = vrot.lane.b32.xlu1 %v1299_v41, %s1168_s17 }
 0x224   :  { %v1303_v42 = vpop.f32.mrf.mxu0 }
 0x226   :  { %v1305_v43 = vpop.f32.mrf.mxu0 }
 0x227   :  { %395 = vrot.lane.b32.xlu1 %v1297_v40, %s1168_s17  ;;  %397 = vrot.lane.b32.xlu0 %v1305_v43, %s1168_s17 }
 0x228   :  { %v1309_v44 = vpop.f32.mrf.mxu0 }
 0x22a   :  { %v1311_v45 = vpop.f32.mrf.mxu0 }
 0x22b   :  { %401 = vrot.lane.b32.xlu0 %v1303_v42, %s1168_s17  ;;  %399 = vrot.lane.b32.xlu1 %v1311_v45, %s1168_s17 }
 0x22f   :  { %403 = vrot.lane.b32.xlu1 %v1309_v44, %s1168_s17 }
 0x291   :  { %v390_v51 = vpop.permute.xlu0 %389 }
 0x292   :  { %v413_v52 = vsel %vm72_vm0, %v1318_v47, %v390_v51 }
 0x293   :  { %1055 = vmatprep.mubr.msk.f32.mxu1 %vm182_vm1, %v413_v52 }
 0x295   :  { %v394_v54 = vpop.permute.xlu0 %393  ;;  %v392_v55 = vpop.permute.xlu1 %391 }
 0x296   :  { %v415_v56 = vsel %vm72_vm0, %v1316_v46, %v394_v54  ;;  %v414_v57 = vsel %vm72_vm0, %v1322_v49, %v392_v55 }
 0x297   :  { %1056 = vmatmul.mubr.msk.f32.vlgmr.msra.gmra.mxu1 %vm182_vm1, %v414_v57 }
 0x298   :  { %1058 = vmatprep.mubr.msk.f32.mxu1 %vm182_vm1, %v415_v56 }
 0x299   :  { %v396_v59 = vpop.permute.xlu1 %395  ;;  %v398_v60 = vpop.permute.xlu0 %397 }
 0x29a   :  { %v416_v61 = vsel %vm72_vm0, %v1320_v48, %v396_v59  ;;  %v417_v62 = vsel %vm72_vm0, %v1329_v53, %v398_v60 }
 0x29b   :  { %1059 = vmatmul.mubr.msk.f32.gmra.mxu1 %vm182_vm1, %v416_v61 }
 0x29c   :  { %1061 = vmatprep.mubr.msk.f32.mxu1 %vm182_vm1, %v417_v62 }
 0x29d   :  { %v402_v0 = vpop.permute.xlu0 %401  ;;  %v400_v1 = vpop.permute.xlu1 %399 }
 0x29e   :  { %v419_v2 = vsel %vm72_vm0, %v1324_v50, %v402_v0  ;;  %v418_v3 = vsel %vm72_vm0, %v1344_v63, %v400_v1 }
 0x29f   :  { %1062 = vmatmul.mubr.msk.f32.gmra.mxu1 %vm182_vm1, %v418_v3 }
 0x2a0   :  { %1064 = vmatprep.mubr.msk.f32.mxu1 %vm182_vm1, %v419_v2 }
 0x2a1   :  { %v404_v4 = vpop.permute.xlu1 %403 }
 0x2a2   :  { %v420_v5 = vsel %vm72_vm0, %v1336_v58, %v404_v4 }
 0x2a3   :  { %1065 = vmatmul.mubr.msk.f32.gmra.mxu1 %vm182_vm1, %v420_v5 }
 0x357   :  { %v1057_v8 = vpop.f32.mrf.mxu1 }
 0x358   :  { %v560_v21 = vsel %vm558_vm2, %v1057_v8, -inf }
 0x359   :  { %v519_v9 = vpop.f32.mrf.mxu1 }
 0x35a   :  { %v559_v16 = vsel %vm558_vm2, %v519_v9, -inf }
 0x35b   :  { %v1060_v10 = vpop.f32.mrf.mxu1 }
 0x35c   :  { %v562_v22 = vsel %vm558_vm2, %v1060_v10, -inf }
 0x35d   :  { %v529_v11 = vpop.f32.mrf.mxu1 }
 0x35e   :  { %v561_v23 = vsel %vm558_vm2, %v529_v11, -inf }
 0x35f   :  { %v1063_v12 = vpop.f32.mrf.mxu1 }
 0x360   :  { %v565_v17 = vsel %vm558_vm2, %v1063_v12, -inf }
 0x361   :  { %v539_v13 = vpop.f32.mrf.mxu1  ;;  %v566_v25 = vmax.f32 %v560_v21, %v565_v17 }
 0x362   :  { %v563_v14 = vsel %vm558_vm2, %v539_v13, -inf }
 0x363   :  { %v1066_v15 = vpop.f32.mrf.mxu1  ;;  %v564_v19 = vmax.f32 %v559_v16, %v563_v14 }
 0x364   :  { %v569_v18 = vsel %vm558_vm2, %v1066_v15, -inf }
 0x365   :  { %v549_v20 = vpop.f32.mrf.mxu1  ;;  %v570_v26 = vmax.f32 %v562_v22, %v569_v18  ;;  %v571_v28 = vmax.f32 %v564_v19, %v566_v25 }
 0x366   :  { %v567_v24 = vsel %vm558_vm2, %v549_v20, -inf }
 0x367   :  { %v568_v27 = vmax.f32 %v561_v23, %v567_v24 }
 0x369   :  { %v572_v29 = vmax.f32 %v568_v27, %v570_v26 }
 0x36b   :  { %v573_v30 = vmax.f32 %v571_v28, %v572_v29 }
 0x36d   :  { %v574_v31 = vrot.slane %v573_v30, 4 }
 0x36f   :  { %v575_v32 = vmax.f32 %v573_v30, %v574_v31 }
 0x371   :  { %v576_v33 = vrot.slane %v575_v32, 2 }
 0x373   :  { %v577_v34 = vmax.f32 %v575_v32, %v576_v33 }
 0x375   :  { %v578_v35 = vrot.slane %v577_v34, 1 }
 0x377   :  { %v579_v36 = vmax.f32 %v577_v34, %v578_v35 }
 0x379   :  { %v580_v37 = vsub.f32 %v519_v9, %v579_v36  ;;  %v581_v51 = vsub.f32 %v1057_v8, %v579_v36  ;;  %v582_v52 = vsub.f32 %v529_v11, %v579_v36  ;;  %v583_v54 = vsub.f32 %v1060_v10, %v579_v36 }
 0x37a   :  { %v584_v55 = vsub.f32 %v539_v13, %v579_v36  ;;  %v585_v60 = vsub.f32 %v1063_v12, %v579_v36  ;;  %v586_v62 = vsub.f32 %v549_v20, %v579_v36  ;;  %v587_v1 = vsub.f32 %v1066_v15, %v579_v36 }
 0x37b   :  { %v588_v56 = vmul.f32 1.442695, %v580_v37  ;;  %v590_v57 = vmul.f32 1.442695, %v581_v51  ;;  %v592_v59 = vmul.f32 1.442695, %v582_v52 }
 0x37c   :  { %v594_v61 = vmul.f32 1.442695, %v583_v54  ;;  %v596_v0 = vmul.f32 1.442695, %v584_v55  ;;  %v598_v2 = vmul.f32 1.442695, %v585_v60 }
 0x37d   :  { %1127 = vpow2.f32 %v588_v56  ;;  %v600_v3 = vmul.f32 1.442695, %v586_v62  ;;  %v602_v4 = vmul.f32 1.442695, %v587_v1  ;;  %v741_v51 = vld [vmem:[%s1438_s5 + $0x18] sm:$0xff]  ;;  %v740_v54 = vld [vmem:[%s1438_s5 + $0x10] sm:$0xff] }
 0x37e   :  { %1129 = vpow2.f32 %v590_v57  ;;  %1067 = vmatprep.subr.mxu0 %v741_v51  ;;  %1087 = vmatprep.subr.mxu1 %v741_v51  ;;  %v739_v55 = vld [vmem:[%s1438_s5 + $0x8] sm:$0xff] }
 0x37f   :  { %1131 = vpow2.f32 %v592_v59  ;;  %1068 = vmatpush3.msra.mxu0 %v741_v51  ;;  %1091 = vmatpush3.msra.mxu1 %v741_v51  ;;  %v738_v59 = vld [vmem:[%s1438_s5] sm:$0xff] }
 0x380   :  { %1133 = vpow2.f32 %v594_v61  ;;  %1069 = vmatprep.subr.mxu0 %v740_v54  ;;  %1088 = vmatprep.subr.mxu1 %v740_v54 }
 0x381   :  { %1135 = vpow2.f32 %v596_v0  ;;  %1070 = vmatpush3.msra.mxu0 %v740_v54  ;;  %1092 = vmatpush3.msra.mxu1 %v740_v54 }
 0x382   :  { %1137 = vpow2.f32 %v598_v2  ;;  %1071 = vmatprep.subr.mxu0 %v739_v55  ;;  %1089 = vmatprep.subr.mxu1 %v739_v55 }
 0x383   :  { %1139 = vpow2.f32 %v600_v3  ;;  %1072 = vmatpush3.msra.mxu0 %v739_v55  ;;  %1093 = vmatpush3.msra.mxu1 %v739_v55 }
 0x384   :  { %1141 = vpow2.f32 %v602_v4  ;;  %1073 = vmatprep.subr.mxu0 %v738_v59  ;;  %1090 = vmatprep.subr.mxu1 %v738_v59 }
 0x385   :  { %1074 = vmatpush3.msra.mxu0 %v738_v59  ;;  %1094 = vmatpush3.msra.mxu1 %v738_v59 }
 0x38a   :  { %v1128_v5 = vpop.eup %1127 }
 0x38b   :  { %v1130_v8 = vpop.eup %1129  ;;  %v604_v9 = vsel %vm558_vm2, %v1128_v5, 0.0 }
 0x38c   :  { %v1132_v10 = vpop.eup %1131  ;;  %v605_v11 = vsel %vm558_vm2, %v1130_v8, 0.0 }
 0x38d   :  { %v1134_v12 = vpop.eup %1133  ;;  %v606_v13 = vadd.f32 %v605_v11, %v604_v9  ;;  %v607_v14 = vsel %vm558_vm2, %v1132_v10, 0.0 }
 0x38e   :  { %v1369_v15 = vpop.eup %1135  ;;  %v609_v17 = vsel %vm558_vm2, %v1134_v12, 0.0 }
 0x38f   :  { %v608_v16 = vadd.f32 %v607_v14, %v606_v13  ;;  %v1138_v18 = vpop.eup %1137  ;;  %v611_v20 = vsel %vm558_vm2, %v1369_v15, 0.0 }
 0x390   :  { %v1140_v21 = vpop.eup %1139  ;;  %v613_v23 = vsel %vm558_vm2, %v1138_v18, 0.0 }
 0x391   :  { %v610_v19 = vadd.f32 %v609_v17, %v608_v16  ;;  %v1375_v24 = vpop.eup %1141  ;;  %v615_v26 = vsel %vm558_vm2, %v1140_v21, 0.0 }
 0x392   :  { %v617_v28 = vsel %vm558_vm2, %v1375_v24, 0.0 }
 0x393   :  { %v612_v22 = vadd.f32 %v611_v20, %v610_v19 }
 0x395   :  { %v614_v25 = vadd.f32 %v613_v23, %v612_v22 }
 0x397   :  { %v616_v27 = vadd.f32 %v615_v26, %v614_v25 }
 0x399   :  { %v618_v29 = vadd.f32 %v617_v28, %v616_v27 }
 0x39b   :  { %v619_v30 = vrot.slane %v618_v29, 4 }
 0x39d   :  { %v620_v31 = vadd.f32 %v619_v30, %v618_v29 }
 0x39f   :  { %v621_v32 = vrot.slane %v620_v31, 2 }
 0x3a1   :  { %v622_v33 = vadd.f32 %v621_v32, %v620_v31 }
 0x3a3   :  { %v623_v34 = vrot.slane %v622_v33, 1 }
 0x3a5   :  { %v624_v35 = vadd.f32 %v623_v34, %v622_v33 }
 0x3a7   :  { %1143 = vrcp.f32 %v624_v35 }
 0x3b4   :  { %v1144_v36 = vpop.eup %1143 }
 0x3b5   :  { %v626_v37 = vmul.f32 %v1144_v36, %v1128_v5  ;;  %v627_v52 = vmul.f32 %v1144_v36, %v1130_v8  ;;  %v628_v56 = vmul.f32 %v1144_v36, %v1132_v10  ;;  %v629_v57 = vmul.f32 %v1144_v36, %v1134_v12 }
 0x3b6   :  { %v632_v60 = vmul.f32 %v1144_v36, %v1140_v21  ;;  %v630_v61 = vmul.f32 %v1144_v36, %v1369_v15  ;;  %v631_v62 = vmul.f32 %v1144_v36, %v1138_v18  ;;  %v633_v0 = vmul.f32 %v1144_v36, %v1375_v24 }
 0x3b7   :  { %683 = vperm.xlu1 %1103, %v626_v37   ;;  %636 = vperm.xlu0 %1102, %v626_v37  }
 0x3bb   :  { %1104 = vset.pattern.permute.xlu1 %v1170_v7  ;;  %1105 = vset.pattern.permute.xlu0 %v1169_v6 }
 0x3bc   :  { %641 = vperm.xlu1 %1104, %v627_v52   ;;  %687 = vperm.xlu0 %1105, %v627_v52  }
 0x3c0   :  { %646 = vperm.xlu1 %1104, %v628_v56   ;;  %1107 = vset.pattern.permute.xlu0 %v1170_v7 }
 0x3c1   :  { %651 = vperm.xlu0 %1107, %v629_v57  }
 0x3c4   :  { %1106 = vset.pattern.permute.xlu1 %v1169_v6 }
 0x3c5   :  { %691 = vperm.xlu1 %1106, %v628_v56   ;;  %666 = vperm.xlu0 %1107, %v632_v60  }
 0x3c9   :  { %695 = vperm.xlu1 %1106, %v629_v57   ;;  %1110 = vset.pattern.permute.xlu0 %v1169_v6 }
 0x3ca   :  { %707 = vperm.xlu0 %1110, %v632_v60  }
 0x3cd   :  { %1108 = vset.pattern.permute.xlu1 %v1170_v7 }
 0x3ce   :  { %656 = vperm.xlu1 %1108, %v630_v61   ;;  %703 = vperm.xlu0 %1110, %v631_v62  }
 0x3d2   :  { %1109 = vset.pattern.permute.xlu1 %v1169_v6 }
 0x3d3   :  { %699 = vperm.xlu1 %1109, %v630_v61  }
 0x3d7   :  { %1111 = vset.pattern.permute.xlu1 %v1170_v7 }
 0x3d8   :  { %661 = vperm.xlu1 %1111, %v631_v62  }
 0x3dc   :  { %671 = vperm.xlu1 %1111, %v633_v0  }
 0x3e0   :  { %1112 = vset.pattern.permute.xlu1 %v1169_v6 }
 0x3e1   :  { %711 = vperm.xlu1 %1112, %v633_v0  }
 0x432   :  { %v684_v1 = vpop.permute.xlu1 %683  ;;  %v637_v2 = vpop.permute.xlu0 %636 }
 0x433   :  { %v714_v3 = vmul.f32 %v684_v1, %v1294_v39  ;;  %v674_v4 = vmul.f32 %v637_v2, %v1318_v47 }
 0x435   :  { %v722_v5 = vadd.f32 %v714_v3, %v674_v4 }
 0x437   :  { %v730_v8 = vmax.f32 %v722_v5, 0.0  ;;  %v642_v9 = vpop.permute.xlu1 %641  ;;  %v688_v10 = vpop.permute.xlu0 %687 }
 0x438   :  { %v675_v11 = vmul.f32 %v642_v9, %v1322_v49  ;;  %v715_v7 = vmul.f32 %v688_v10, %v1299_v41 }
 0x439   :  { %1075 = vmatprep.mubr.msk.f32.mxu0 %vm72_vm0, %v730_v8 }
 0x43a   :  { %v723_v12 = vadd.f32 %v715_v7, %v675_v11 }
 0x43b   :  { %v647_v13 = vpop.permute.xlu1 %646 }
 0x43c   :  { %v731_v6 = vmax.f32 %v723_v12, 0.0  ;;  %v652_v14 = vpop.permute.xlu0 %651  ;;  %v676_v47 = vmul.f32 %v1316_v46, %v647_v13 }
 0x43d   :  { %v677_v49 = vmul.f32 %v1320_v48, %v652_v14 }
 0x43e   :  { %1076 = vmatmul.mubr.msk.f32.vlgmr.msra.gmra.mxu0 %vm72_vm0, %v731_v6 }
 0x440   :  { %v692_v15 = vpop.permute.xlu1 %691  ;;  %v667_v39 = vpop.permute.xlu0 %666 }
 0x441   :  { %v716_v16 = vmul.f32 %v1292_v38, %v692_v15  ;;  %v680_v21 = vmul.f32 %v1324_v50, %v667_v39 }
 0x443   :  { %v724_v17 = vadd.f32 %v716_v16, %v676_v47 }
 0x444   :  { %v696_v18 = vpop.permute.xlu1 %695 }
 0x445   :  { %v732_v19 = vmax.f32 %v724_v17, 0.0  ;;  %v717_v41 = vmul.f32 %v1297_v40, %v696_v18  ;;  %v708_v20 = vpop.permute.xlu0 %707 }
 0x446   :  { %v720_v22 = vmul.f32 %v1303_v42, %v708_v20 }
 0x447   :  { %v725_v23 = vadd.f32 %v717_v41, %v677_v49  ;;  %1078 = vmatprep.mubr.msk.f32.mxu0 %vm72_vm0, %v732_v19 }
 0x448   :  { %v728_v24 = vadd.f32 %v720_v22, %v680_v21 }
 0x449   :  { %v733_v25 = vmax.f32 %v725_v23, 0.0  ;;  %v657_v46 = vpop.permute.xlu1 %656  ;;  %v704_v27 = vpop.permute.xlu0 %703 }
 0x44a   :  { %v736_v26 = vmax.f32 %v728_v24, 0.0  ;;  %v678_v48 = vmul.f32 %v657_v46, %v1329_v53  ;;  %v719_v29 = vmul.f32 %v704_v27, %v1311_v45  ;;  %v936_v45 = vld [vmem:[%s1439_s6] ss:$0 sm:$0xff]  ;;  %s1171_s6 = smov [#allocation2]  }
 0x44b   :  { %1079 = vmatmul.mubr.msk.f32.gmra.mxu0 %vm72_vm0, %v733_v25  ;;  %s891_s25 = sshll.u32 %s1171_s6, 4  ;;  %s892_s25 = int_to_ptr.vmem [resolvable:$true] %s891_s25 }
 0x44c   :  { %1084 = vmatprep.mubr.msk.f32.mxu1 %vm72_vm0, %v736_v26  ;;  %s1145_s26 = scalar_lea.vmem %s892_s25, 1024  ;;  %p1150_p1 = scmp.lt.s32.totalorder %s892_s25, %s892_s25 }
 0x44d   :  { %p1146_p0 = scmp.ne.s32.totalorder %s892_s25, %s1145_s26  ;;  %p1151_p2 = scmp.lt.s32.totalorder %s1145_s26, %s1145_s26 }
 0x44e   :  { %v700_v38 = vpop.permute.xlu1 %699 }
 0x44f   :  { %v718_v40 = vmul.f32 %v700_v38, %v1305_v43  ;;  %p1152_p3 = por %p1151_p2, %p1150_p1 }
 0x451   :  { %v726_v50 = vadd.f32 %v718_v40, %v678_v48  ;;  %p1153_p4 = pnand %p1152_p3, %p1146_p0 }
 0x453   :  { %v734_v28 = vmax.f32 %v726_v50, 0.0  ;;  %v662_v42 = vpop.permute.xlu1 %661 }
 0x454   :  { %v679_v30 = vmul.f32 %v662_v42, %v1344_v63 }
 0x455   :  { %1081 = vmatprep.mubr.msk.f32.mxu0 %vm72_vm0, %v734_v28 }
 0x456   :  { %v727_v31 = vadd.f32 %v719_v29, %v679_v30 }
 0x457   :  { %v672_v32 = vpop.permute.xlu1 %671 }
 0x458   :  { %v735_v33 = vmax.f32 %v727_v31, 0.0  ;;  %v681_v53 = vmul.f32 %v1336_v58, %v672_v32 }
 0x45a   :  { %1082 = vmatmul.mubr.msk.f32.gmra.mxu0 %vm72_vm0, %v735_v33 }
 0x45c   :  { %v712_v34 = vpop.permute.xlu1 %711 }
 0x45d   :  { %v721_v43 = vmul.f32 %v1309_v44, %v712_v34 }
 0x45f   :  { %v729_v35 = vadd.f32 %v721_v43, %v681_v53 }
 0x461   :  { %v737_v36 = vmax.f32 %v729_v35, 0.0 }
 0x463   :  { %1085 = vmatmul.mubr.msk.f32.vlgmr.msra.gmra.mxu1 %vm72_vm0, %v737_v36 }
 0x4fe   :  { %v1077_v63 = vpop.f32.mrf.mxu0 }
 0x4ff   :  { %v845_v37 = vadd.f32 %v1077_v63, %v936_v45 }
 0x500   :  { %v839_v51 = vpop.f32.mrf.mxu0 }
 0x501   :  { %879 = vst [vmem:[#allocation2 + $0x8] sm:$0xff] %v845_v37  ;;  %v840_v52 = vadd.f32 %v936_v45, %v839_v51 }
 0x503   :  { %878 = vst [vmem:[#allocation2] sm:$0xff] %v840_v52 }
 0x50b   :  { %v1080_v54 = vpop.f32.mrf.mxu0 }
 0x50c   :  { %v855_v55 = vadd.f32 %v1080_v54, %v936_v45 }
 0x50d   :  { %v849_v56 = vpop.f32.mrf.mxu0 }
 0x50e   :  { %881 = vst [vmem:[#allocation2 + $0x18] sm:$0xff] %v855_v55  ;;  %v850_v58 = vadd.f32 %v936_v45, %v849_v56 }
 0x510   :  { %880 = vst [vmem:[#allocation2 + $0x10] sm:$0xff] %v850_v58 }
 0x51a   :  { %v1083_v44 = vpop.f32.mrf.mxu0 }
 0x51b   :  { %v865_v57 = vadd.f32 %v1083_v44, %v936_v45 }
 0x51c   :  { %v859_v59 = vpop.f32.mrf.mxu0 }
 0x51d   :  { %883 = vst [vmem:[#allocation2 + $0x28] sm:$0xff] %v865_v57  ;;  %v860_v60 = vadd.f32 %v936_v45, %v859_v59 }
 0x51f   :  { %882 = vst [vmem:[#allocation2 + $0x20] sm:$0xff] %v860_v60 }
 0x523   :  { %v1086_v61 = vpop.f32.mrf.mxu1 }
 0x524   :  { %v875_v62 = vadd.f32 %v1086_v61, %v936_v45 }
 0x525   :  { %v869_v0 = vpop.f32.mrf.mxu1 }
 0x526   :  { %885 = vst [vmem:[#allocation2 + $0x38] sm:$0xff] %v875_v62  ;;  %v870_v1 = vadd.f32 %v936_v45, %v869_v0 }
 0x528   :  { %884 = vst [vmem:[#allocation2 + $0x30] sm:$0xff] %v870_v1 }
 0x529   :  { %1156 = shalt.err (!%p1153_p4)
}
 0x52a   :  { %s1172_s27 = smov 128   ;;  %s1173_s28 = smov 8  }
 0x52b   :  { %897 = dma.vmem_to_hbm [thread:$0]  %s892_s25, 1024, %s1440_s7, [#allocation3], %s1172_s27, %s1172_s27, %s1173_s28  }
 0x52c   :  { %1165 = dma.done.wait [#allocation3], 1024  }
 0x52d   :  { %1166 = vsyncadd [#allocation3], 4294966272 }
 0x52e   :  { %901 = vsyncpa [#allocation3], 1 }

</bundles_post_ra>
